<compile_context>
chip_gen: v7x
topology: tpu7x:2x2x1
jax: 0.10.0
libtpu: 0.0.40
codegen_flags: <defaults>
</compile_context>

<pallas_src>
import functools

import jax
import jax.numpy as jnp
import numpy as np
from jax.experimental import pallas as pl
from jax.experimental.pallas import tpu as pltpu


def _round_up(v, m):
    return (v + m - 1) // m * m


def _vmem_capacity_bytes():
    """Best-effort VMEM capacity query (None if unavailable)."""
    try:
        info = pltpu.get_tpu_info()
        cap = getattr(info, "vmem_capacity_bytes", None)
        return int(cap) if cap else None
    except Exception:
        return None


def _tile_and_pad(dim, tile_max, align=128):
    """Pick a lane-aligned tile and a padded extent for one GEMM dimension.

    Prefers a tile that divides round_up(dim, align); if the only divisors are
    much smaller than tile_max, pads the dimension further up instead of
    collapsing the tile (a few zero lanes are cheaper than tiny MXU tiles and
    extra ~0.35us grid steps)."""
    d = _round_up(dim, align)
    t = max(align, (min(tile_max, d) // align) * align)
    cand = t
    while cand >= align and d % cand:
        cand -= align
    if cand >= align and 2 * cand >= t:
        return cand, d
    return t, _round_up(dim, t)


def _geometry(M, I, O, tn_req, to_req, tk_req, mm_size, out_size, out_is_f32,
              *, budget, w_budget):
    """Choose (tn, to, tk, padded extents, #K-steps) under a VMEM budget."""

    def cfg(tk_eff, I_pad, to_eff, O_pad):
        n_k = I_pad // tk_eff
        use_acc = (n_k > 1) and not out_is_f32
        tn_eff = min(tn_req, _round_up(M, 16))
        tn_eff = max(16, tn_eff - tn_eff % 16)
        while True:
            est = (2 * tn_eff * tk_eff * mm_size        # xm tile (double-buffered)
                   + 2 * tk_eff * to_eff * mm_size      # W^T tile
                   + 2 * tn_eff * to_eff * out_size     # out tile
                   + (tn_eff * to_eff * 4 if use_acc else 0)
                   + 2 * to_eff * 4)                    # bias
            if est <= budget or tn_eff <= 16:
                break
            tn_eff = max(16, ((tn_eff // 2) // 16) * 16)
        return dict(tn=tn_eff, to=to_eff, tk=tk_eff,
                    I_pad=I_pad, O_pad=O_pad, n_k=n_k, est=est)

    I128 = _round_up(I, 128)
    O128 = _round_up(O, 128)

    # Preferred: whole W^T resident in VMEM -> fetched once, single K step,
    # no accumulator pass, no K/O re-streaming of W.
    if I128 * O128 * mm_size <= w_budget:
        g = cfg(I128, I128, O128, O128)
        if g["est"] <= budget:
            return g

    # Tiled fallback for large weights.
    tk_eff, I_pad = _tile_and_pad(I, tk_req)
    to_eff, O_pad = _tile_and_pad(O, to_req)
    return cfg(tk_eff, I_pad, to_eff, O_pad)


# ----------------------------- Pallas kernels ------------------------------


def _mm_bias_kernel(xm_ref, wt_ref, b_ref, o_ref):
    """Whole-K GEMM: one MXU pass per (rows, out) tile, bias fused."""
    o_ref[...] = (
        jnp.dot(xm_ref[...], wt_ref[...], preferred_element_type=jnp.float32)
        + b_ref[...]
    ).astype(o_ref.dtype)


def _mm_bias_ksplit_f32_kernel(xm_ref, wt_ref, b_ref, o_ref):
    """K-split GEMM, f32 output: accumulate straight into the resident out tile."""
    k = pl.program_id(2)

    @pl.when(k == 0)
    def _init():
        o_ref[...] = jnp.zeros_like(o_ref) + b_ref[...]

    o_ref[...] += jnp.dot(xm_ref[...], wt_ref[...],
                          preferred_element_type=jnp.float32)


def _mm_bias_ksplit_acc_kernel(xm_ref, wt_ref, b_ref, o_ref, acc_ref):
    """K-split GEMM, narrow output dtype: f32 scratch accumulator."""
    k = pl.program_id(2)

    @pl.when(k == 0)
    def _init():
        acc_ref[...] = jnp.zeros_like(acc_ref)

    acc_ref[...] += jnp.dot(xm_ref[...], wt_ref[...],
                            preferred_element_type=jnp.float32)

    @pl.when(k == pl.num_programs(2) - 1)
    def _fin():
        o_ref[...] = (acc_ref[...] + b_ref[...]).astype(o_ref.dtype)


# ------------------------------- wrapper ------------------------------------


def mod_linear(x, z, params, *, tn=1024, to=512, tk=1024,
               mm_dtype=jnp.bfloat16, out_dtype=None,
               w_resident_bytes=None, vmem_limit_bytes=None):
    """Forward of ModLinear(bias=True, mod_bias=True, output_mode=False)."""
    w = params["weight"]          # (O, I)
    bias = params["bias"]         # (O,)
    wa = params["weight_alpha"]   # (I, S)
    ba = params["bias_alpha"]     # (I,)
    wb = params["weight_beta"]    # (I, S)
    bb = params["bias_beta"]      # (I,)

    x_shape = x.shape
    B = x_shape[0]
    I = x_shape[-1]
    O = w.shape[0]
    S = z.shape[-1]
    out_dtype = x.dtype if out_dtype is None else out_dtype
    out_is_f32 = jnp.dtype(out_dtype) == jnp.dtype(jnp.float32)

    x3 = x.reshape(B, -1, I).astype(jnp.float32)     # (B, N, I)
    N = x3.shape[1]
    M = B * N                                        # batch flattened into rows
    z2 = z.reshape(B, S).astype(jnp.float32)

    # ---- per-generation VMEM budgets (v5e/v6e: 128 MiB, v7x: 64 MiB) ----
    cap = _vmem_capacity_bytes()
    if cap is not None and cap >= (96 << 20):
        vmem_limit = (100 << 20) if vmem_limit_bytes is None else vmem_limit_bytes
        w_budget = (24 << 20) if w_resident_bytes is None else w_resident_bytes
    else:
        vmem_limit = (48 << 20) if vmem_limit_bytes is None else vmem_limit_bytes
        w_budget = (12 << 20) if w_resident_bytes is None else w_resident_bytes

    mm_size = jnp.dtype(mm_dtype).itemsize
    out_size = jnp.dtype(out_dtype).itemsize
    geo = _geometry(M, I, O, tn, to, tk, mm_size, out_size, out_is_f32,
                    budget=max(vmem_limit - (6 << 20), 8 << 20),
                    w_budget=w_budget)
    tn_eff, to_eff, tk_eff = geo["tn"], geo["to"], geo["tk"]
    I_pad, O_pad, n_k = geo["I_pad"], geo["O_pad"], geo["n_k"]
    M_pad = _round_up(M, tn_eff)

    # ---- tiny prologue (fused by XLA): alpha/beta + modulation, bf16 cast ----
    hi = jax.lax.Precision.HIGHEST
    alpha = jnp.dot(z2, wa.T.astype(jnp.float32), precision=hi) + ba.astype(jnp.float32)
    beta = jnp.dot(z2, wb.T.astype(jnp.float32), precision=hi) + bb.astype(jnp.float32)
    xm = ((x3 + beta[:, None, :]) * alpha[:, None, :]).astype(mm_dtype)
    xm = xm.reshape(M, I)
    xm = jnp.pad(xm, ((0, M_pad - M), (0, I_pad - I)))

    # ---- parameters: pad / pre-transpose / cast once in the wrapper ----
    wt = jnp.pad(w, ((0, O_pad - O), (0, I_pad - I))).T.astype(mm_dtype)   # (I_pad, O_pad)
    b_p = jnp.pad(bias, (0, O_pad - O)).reshape(1, O_pad).astype(jnp.float32)

    n_m = M_pad // tn_eff
    n_o = O_pad // to_eff

    if n_k == 1:
        grid = (n_m, n_o)
        kernel = _mm_bias_kernel
        in_specs = [
            pl.BlockSpec((tn_eff, tk_eff), lambda m, o: (m, 0)),   # xm
            pl.BlockSpec((tk_eff, to_eff), lambda m, o: (0, o)),   # W^T (resident)
            pl.BlockSpec((1, to_eff), lambda m, o: (0, o)),        # bias
        ]
        out_specs = pl.BlockSpec((tn_eff, to_eff), lambda m, o: (m, o))
        scratch = []
        sem = ("parallel", "parallel")
    else:
        grid = (n_m, n_o, n_k)
        in_specs = [
            pl.BlockSpec((tn_eff, tk_eff), lambda m, o, k: (m, k)),  # xm
            pl.BlockSpec((tk_eff, to_eff), lambda m, o, k: (k, o)),  # W^T
            pl.BlockSpec((1, to_eff), lambda m, o, k: (0, o)),       # bias
        ]
        out_specs = pl.BlockSpec((tn_eff, to_eff), lambda m, o, k: (m, o))
        sem = ("parallel", "parallel", "arbitrary")
        if out_is_f32:
            kernel = _mm_bias_ksplit_f32_kernel
            scratch = []
        else:
            kernel = _mm_bias_ksplit_acc_kernel
            scratch = [pltpu.VMEM((tn_eff, to_eff), jnp.float32)]

    out = pl.pallas_call(
        kernel,
        out_shape=jax.ShapeDtypeStruct((M_pad, O_pad), out_dtype),
        grid=grid,
        in_specs=in_specs,
        out_specs=out_specs,
        scratch_shapes=scratch,
        compiler_params=pltpu.CompilerParams(
            dimension_semantics=sem,
            vmem_limit_bytes=int(vmem_limit),
        ),
    )(xm, wt, b_p)

    out = out[:M, :O].reshape(B, N, O)
    return out.reshape(*x_shape[:-1], O)


# ------------------------------ test harness --------------------------------


def init_params(key, in_features, out_features, style_features,
                weight_gain=1.0, bias_init=0.0):
    """Deterministic init matching ModLinear.__init__ shapes/scales."""
    k1, k2, k3 = jax.random.split(key, 3)
    wg = weight_gain / np.sqrt(in_features)
    return {
        "weight": jax.random.normal(k1, (out_features, in_features),
                                    jnp.float32) * wg,
        "bias": jnp.full((out_features,), np.float32(bias_init)),
        "weight_alpha": jax.random.normal(k2, (in_features, style_features),
                                          jnp.float32) / np.sqrt(style_features),
        "bias_alpha": jnp.ones((in_features,), jnp.float32),
        "weight_beta": jax.random.normal(k3, (in_features, style_features),
                                         jnp.float32) / np.sqrt(style_features),
        "bias_beta": jnp.zeros((in_features,), jnp.float32),
    }


def _reference(x, z, params):
    """Pure-JAX reference replicating the PyTorch forward (modulate W) exactly."""
    hi = jax.lax.Precision.HIGHEST
    w = params["weight"]
    bias = params["bias"]
    B, I = x.shape[0], x.shape[-1]
    x3 = x.reshape(B, -1, I).astype(jnp.float32)
    z2 = z.reshape(B, -1).astype(jnp.float32)
    alpha = jnp.dot(z2, params["weight_alpha"].T, precision=hi) + params["bias_alpha"]
    beta = jnp.dot(z2, params["weight_beta"].T, precision=hi) + params["bias_beta"]
    wmod = w[None] * alpha[:, None, :]                              # (B, O, I)
    xin = x3 + beta[:, None, :]
    out = jnp.einsum("bni,boi->bno", xin, wmod, precision=hi) + bias[None, None, :]
    return out.reshape(*x.shape[:-1], w.shape[0])


if __name__ == "__main__":
    key = jax.random.PRNGKey(0)
    kp, kx, kz, kp2, kx2, kz2 = jax.random.split(key, 6)

    # --- Case 1: small non-128-aligned shapes, W^T resident, single-K path ---
    in_f, out_f, style_f = 48, 80, 24
    B, H, Wsp = 3, 8, 6            # x: (3, 8, 6, 48) -> flattened rows M = 144
    params = init_params(kp, in_f, out_f, style_f)
    x = jax.random.normal(kx, (B, H, Wsp, in_f), jnp.float32)
    z = jax.random.normal(kz, (B, style_f), jnp.float32)
    ref = _reference(x, z, params)

    out_f32 = jax.block_until_ready(
        jax.jit(functools.partial(mod_linear, mm_dtype=jnp.float32))(x, z, params))
    assert out_f32.shape == (B, H, Wsp, out_f)
    assert jnp.allclose(out_f32, ref, rtol=1e-4, atol=1e-5), "f32 mismatch vs reference"

    out_bf16 = jax.block_until_ready(jax.jit(mod_linear)(x, z, params))
    assert out_bf16.shape == (B, H, Wsp, out_f)
    assert jnp.allclose(out_bf16, ref, rtol=5e-2, atol=5e-2), "bf16 mismatch vs reference"

    # --- Case 2: force the tiled / K-split grid paths (W residency disabled) ---
    in_f2, out_f2, style_f2 = 200, 136, 16
    B2, N2 = 2, 35
    params2 = init_params(kp2, in_f2, out_f2, style_f2)
    x2 = jax.random.normal(kx2, (B2, N2, in_f2), jnp.float32)
    z2 = jax.random.normal(kz2, (B2, style_f2), jnp.float32)
    ref2 = _reference(x2, z2, params2)

    tiled_f32 = functools.partial(mod_linear, mm_dtype=jnp.float32,
                                  tn=32, to=128, tk=128, w_resident_bytes=0)
    out2 = jax.block_until_ready(jax.jit(tiled_f32)(x2, z2, params2))
    assert out2.shape == (B2, N2, out_f2)
    assert jnp.allclose(out2, ref2, rtol=1e-4, atol=1e-5), "K-split f32 mismatch"

    tiled_bf16o = functools.partial(mod_linear, mm_dtype=jnp.float32,
                                    out_dtype=jnp.bfloat16,
                                    tn=32, to=128, tk=128, w_resident_bytes=0)
    out3 = jax.block_until_ready(jax.jit(tiled_bf16o)(x2, z2, params2))
    assert out3.shape == (B2, N2, out_f2)
    assert jnp.allclose(out3.astype(jnp.float32), ref2, rtol=2e-2, atol=2e-2), \
        "K-split bf16-out mismatch"

    print("KERNEL_OK")
</pallas_src>

<mosaic_0001>
module attributes {stable_mosaic.version = 11 : i64} {
  func.func @_mm_bias_kernel(%arg0: i32, %arg1: i32, %arg2: memref<144x128xf32, #tpu.memory_space<vmem>>, %arg3: memref<128x128xf32, #tpu.memory_space<vmem>>, %arg4: memref<1x128xf32, #tpu.memory_space<vmem>>, %arg5: memref<144x128xf32, #tpu.memory_space<vmem>>) attributes {dimension_semantics = [#tpu.dimension_semantics<parallel>, #tpu.dimension_semantics<parallel>], iteration_bounds = array<i64: 1, 1>, scalar_prefetch = 0 : i64, scratch_operands = 0 : i64, tpu.core_type = #tpu.core_type<tc>, window_params = [{transform_indices = @transform_0, window_bounds = array<i64: 144, 128>}, {transform_indices = @transform_1, window_bounds = array<i64: 128, 128>}, {transform_indices = @transform_2, window_bounds = array<i64: 1, 128>}, {transform_indices = @transform_3, window_bounds = array<i64: 144, 128>}]} {
    %c0 = arith.constant 0 : index
    %c0_0 = arith.constant 0 : index
    %0 = vector.load %arg2[%c0, %c0_0] : memref<144x128xf32, #tpu.memory_space<vmem>>, vector<144x128xf32>
    %c0_1 = arith.constant 0 : index
    %c0_2 = arith.constant 0 : index
    %1 = vector.load %arg3[%c0_1, %c0_2] : memref<128x128xf32, #tpu.memory_space<vmem>>, vector<128x128xf32>
    %cst = arith.constant dense<0.000000e+00> : vector<144x128xf32>
    %2 = tpu.matmul %0, %1, %cst {dimension_numbers = #tpu.dot_dimension_numbers<[1], [0], [0], [1], [0, 0, 1, 1], [], []>} : vector<144x128xf32>, vector<128x128xf32>, vector<144x128xf32> -> vector<144x128xf32>
    %c0_3 = arith.constant 0 : index
    %c0_4 = arith.constant 0 : index
    %3 = vector.load %arg4[%c0_3, %c0_4] : memref<1x128xf32, #tpu.memory_space<vmem>>, vector<1x128xf32>
    %4 = vector.broadcast %3 : vector<1x128xf32> to vector<144x128xf32>
    %5 = arith.addf %2, %4 : vector<144x128xf32>
    %c0_5 = arith.constant 0 : index
    %c0_6 = arith.constant 0 : index
    %6 = vector.load %arg5[%c0_5, %c0_6] : memref<144x128xf32, #tpu.memory_space<vmem>>, vector<144x128xf32>
    tpu.vector_store %arg5[%c0_5, %c0_6], %5 {strides = array<i32>} : memref<144x128xf32, #tpu.memory_space<vmem>>, vector<144x128xf32>,
    return
  }
  func.func @transform_0(%arg0: i32, %arg1: i32) -> (i32, i32) {
    %c0_i32 = arith.constant 0 : i32
    %c0_i32_0 = arith.constant 0 : i32
    return %arg0, %c0_i32 : i32, i32
  }
  func.func @transform_1(%arg0: i32, %arg1: i32) -> (i32, i32) {
    %c0_i32 = arith.constant 0 : i32
    %c0_i32_0 = arith.constant 0 : i32
    return %c0_i32, %arg1 : i32, i32
  }
  func.func @transform_2(%arg0: i32, %arg1: i32) -> (i32, i32) {
    %c0_i32 = arith.constant 0 : i32
    %c0_i32_0 = arith.constant 0 : i32
    return %c0_i32, %arg1 : i32, i32
  }
  func.func @transform_3(%arg0: i32, %arg1: i32) -> (i32, i32) {
    %c0_i32 = arith.constant 0 : i32
    return %arg0, %arg1 : i32, i32
  }
}

</mosaic_0001>

<bundles_post_ra>
// kernel: mod_linear.1
= control target key start
LH: loop header
LB: loop body
LE: loop exit
PB: predicated region body
PF: predicated region fallthrough
CT: control target
= control target key end

     0   :  { %s553_s1 = inlined_call_operand.vmem [shape: f32[128,128], index: 1, kind: input, shape index: {}]   ;;  %s554_s0 = inlined_call_operand.vmem [shape: f32[144,128], index: 0, kind: input, shape index: {}]   ;;  %s555_s2 = inlined_call_operand.vmem [shape: f32[1,128], index: 2, kind: input, shape index: {}]   ;;  %s556_s3 = inlined_call_operand.vmem [shape: f32[144,128], index: 3, kind: output, shape index: {}]  }
   0x1   :  { %v32_v0 = vld [vmem:[%s553_s1] sm:$0xff]  ;;  %v33_v1 = vld [vmem:[%s553_s1 + $0x8] sm:$0xff]  ;;  %v34_v2 = vld [vmem:[%s553_s1 + $0x10] sm:$0xff] }
   0x2   :  { %v326_v3 = vpack.c.bf16 %v33_v1, %v32_v0  ;;  %v35_v4 = vld [vmem:[%s553_s1 + $0x18] sm:$0xff]  ;;  %v36_v6 = vld [vmem:[%s553_s1 + $0x20] sm:$0xff]  ;;  %v37_v7 = vld [vmem:[%s553_s1 + $0x28] sm:$0xff] }
   0x3   :  { %v330_v5 = vpack.c.bf16 %v35_v4, %v34_v2  ;;  %v334_v8 = vpack.c.bf16 %v37_v7, %v36_v6  ;;  %v14_v9 = vld [vmem:[%s554_s0] sm:$0xff]  ;;  %v38_v10 = vld [vmem:[%s553_s1 + $0x30] sm:$0xff]  ;;  %v39_v11 = vld [vmem:[%s553_s1 + $0x38] sm:$0xff] }
   0x4   :  { %327 = vmatprep.subr.bf16.mxu0 %v326_v3  ;;  %358 = vmatprep.subr.bf16.mxu1 %v326_v3  ;;  %v24_v12 = vld [vmem:[%s554_s0 + $0x50] sm:$0xff]  ;;  %v338_v13 = vpack.c.bf16 %v39_v11, %v38_v10  ;;  %v40_v14 = vld [vmem:[%s553_s1 + $0x40] sm:$0xff]  ;;  %v41_v15 = vld [vmem:[%s553_s1 + $0x48] sm:$0xff] }
   0x5   :  { %329 = vmatpush3.bf16.msra.mxu0 %v326_v3  ;;  %366 = vmatpush3.bf16.msra.mxu1 %v326_v3  ;;  %v342_v16 = vpack.c.bf16 %v41_v15, %v40_v14  ;;  %v42_v17 = vld [vmem:[%s553_s1 + $0x50] sm:$0xff]  ;;  %v43_v18 = vld [vmem:[%s553_s1 + $0x58] sm:$0xff]  ;;  %v44_v20 = vld [vmem:[%s553_s1 + $0x60] sm:$0xff] }
   0x6   :  { %331 = vmatprep.subr.bf16.mxu0 %v330_v5  ;;  %359 = vmatprep.subr.bf16.mxu1 %v330_v5  ;;  %v346_v19 = vpack.c.bf16 %v43_v18, %v42_v17  ;;  %v45_v21 = vld [vmem:[%s553_s1 + $0x68] sm:$0xff]  ;;  %v46_v23 = vld [vmem:[%s553_s1 + $0x70] sm:$0xff]  ;;  %v47_v24 = vld [vmem:[%s553_s1 + $0x78] sm:$0xff] }
   0x7   :  { %299 = vmatprep.mubr.f32.mxu0 %v14_v9  ;;  %314 = vmatprep.mubr.f32.mxu1 %v24_v12  ;;  %v350_v22 = vpack.c.bf16 %v45_v21, %v44_v20  ;;  %v354_v25 = vpack.c.bf16 %v47_v24, %v46_v23  ;;  %v15_v26 = vld [vmem:[%s554_s0 + $0x8] sm:$0xff]  ;;  %v25_v27 = vld [vmem:[%s554_s0 + $0x58] sm:$0xff]  ;;  %v16_v28 = vld [vmem:[%s554_s0 + $0x10] sm:$0xff] }
   0x8   :  { %v26_v29 = vld [vmem:[%s554_s0 + $0x60] sm:$0xff]  ;;  %v17_v30 = vld [vmem:[%s554_s0 + $0x18] sm:$0xff]  ;;  %v27_v31 = vld [vmem:[%s554_s0 + $0x68] sm:$0xff] }
   0x9   :  { %333 = vmatpush3.bf16.msra.mxu0 %v330_v5  ;;  %367 = vmatpush3.bf16.msra.mxu1 %v330_v5  ;;  %v18_v32 = vld [vmem:[%s554_s0 + $0x20] sm:$0xff]  ;;  %v28_v33 = vld [vmem:[%s554_s0 + $0x70] sm:$0xff]  ;;  %v19_v34 = vld [vmem:[%s554_s0 + $0x28] sm:$0xff] }
   0xa   :  { %335 = vmatprep.subr.bf16.mxu0 %v334_v8  ;;  %360 = vmatprep.subr.bf16.mxu1 %v334_v8  ;;  %v29_v35 = vld [vmem:[%s554_s0 + $0x78] sm:$0xff]  ;;  %v20_v36 = vld [vmem:[%s554_s0 + $0x30] sm:$0xff]  ;;  %v30_v37 = vld [vmem:[%s554_s0 + $0x80] sm:$0xff] }
   0xb   :  { %v21_v38 = vld [vmem:[%s554_s0 + $0x38] sm:$0xff]  ;;  %v31_v39 = vld [vmem:[%s554_s0 + $0x88] sm:$0xff]  ;;  %v22_v40 = vld [vmem:[%s554_s0 + $0x40] sm:$0xff] }
   0xc   :  { %v23_v41 = vld [vmem:[%s554_s0 + $0x48] sm:$0xff]  ;;  %v232_v42 = vld [vmem:[%s555_s2] ss:$0 sm:$0xff] }
   0xd   :  { %337 = vmatpush3.bf16.msra.mxu0 %v334_v8  ;;  %368 = vmatpush3.bf16.msra.mxu1 %v334_v8 }
   0xe   :  { %339 = vmatprep.subr.bf16.mxu0 %v338_v13  ;;  %361 = vmatprep.subr.bf16.mxu1 %v338_v13 }
  0x11   :  { %341 = vmatpush3.bf16.msra.mxu0 %v338_v13  ;;  %369 = vmatpush3.bf16.msra.mxu1 %v338_v13 }
  0x12   :  { %343 = vmatprep.subr.bf16.mxu0 %v342_v16  ;;  %362 = vmatprep.subr.bf16.mxu1 %v342_v16 }
  0x15   :  { %345 = vmatpush3.bf16.msra.mxu0 %v342_v16  ;;  %370 = vmatpush3.bf16.msra.mxu1 %v342_v16 }
  0x16   :  { %347 = vmatprep.subr.bf16.mxu0 %v346_v19  ;;  %363 = vmatprep.subr.bf16.mxu1 %v346_v19 }
  0x19   :  { %349 = vmatpush3.bf16.msra.mxu0 %v346_v19  ;;  %371 = vmatpush3.bf16.msra.mxu1 %v346_v19 }
  0x1a   :  { %351 = vmatprep.subr.bf16.mxu0 %v350_v22  ;;  %364 = vmatprep.subr.bf16.mxu1 %v350_v22 }
  0x1d   :  { %353 = vmatpush3.bf16.msra.mxu0 %v350_v22  ;;  %372 = vmatpush3.bf16.msra.mxu1 %v350_v22 }
  0x1e   :  { %355 = vmatprep.subr.bf16.mxu0 %v354_v25  ;;  %365 = vmatprep.subr.bf16.mxu1 %v354_v25 }
  0x21   :  { %357 = vmatpush3.bf16.msra.mxu0 %v354_v25  ;;  %373 = vmatpush3.bf16.msra.mxu1 %v354_v25 }
  0x24   :  { %300 = vmatmul.mubr.f32.vlgmr.msra.gmra.mrb[0].mxu0 %v15_v26  ;;  %315 = vmatmul.mubr.f32.vlgmr.msra.gmra.mrb[0].mxu1 %v25_v27 }
  0x25   :  { %302 = vmatprep.mubr.f32.mxu0 %v16_v28  ;;  %317 = vmatprep.mubr.f32.mxu1 %v26_v29 }
  0x28   :  { %303 = vmatmul.mubr.f32.gmra.mrb[2].mxu0 %v17_v30  ;;  %318 = vmatmul.mubr.f32.gmra.mrb[2].mxu1 %v27_v31 }
  0x29   :  { %305 = vmatprep.mubr.f32.mxu0 %v18_v32  ;;  %320 = vmatprep.mubr.f32.mxu1 %v28_v33 }
  0x2c   :  { %306 = vmatmul.mubr.f32.gmra.mrb[4].mxu0 %v19_v34  ;;  %321 = vmatmul.mubr.f32.gmra.mrb[4].mxu1 %v29_v35 }
  0x2d   :  { %308 = vmatprep.mubr.f32.mxu0 %v20_v36  ;;  %323 = vmatprep.mubr.f32.mxu1 %v30_v37 }
  0x30   :  { %309 = vmatmul.mubr.f32.gmra.mrb[6].mxu0 %v21_v38  ;;  %324 = vmatmul.mubr.f32.gmra.mrb[6].mxu1 %v31_v39 }
  0x31   :  { %311 = vmatprep.mubr.f32.mxu0 %v22_v40 }
  0x34   :  { %312 = vmatmul.mubr.f32.gmra.mrb[8].mxu0 %v23_v41 }
  0xf7   :  { %v301_v43 = vpop.f32.mrb[0].mxu0  ;;  %v316_v44 = vpop.f32.mrb[0].mxu1 }
  0xf8   :  { %v127_v45 = vadd.f32 %v301_v43, %v232_v42  ;;  %v121_v46 = vpop.f32.mrb[1].mxu0  ;;  %v177_v47 = vadd.f32 %v316_v44, %v232_v42  ;;  %v171_v48 = vpop.f32.mrb[1].mxu1 }
  0xf9   :  { %v122_v49 = vadd.f32 %v232_v42, %v121_v46  ;;  %v172_v50 = vadd.f32 %v232_v42, %v171_v48 }
  0xfa   :  { %211 = vst [vmem:[%s556_s3 + $0x8] sm:$0xff] %v127_v45  ;;  %221 = vst [vmem:[%s556_s3 + $0x58] sm:$0xff] %v177_v47 }
  0xfb   :  { %210 = vst [vmem:[%s556_s3] sm:$0xff] %v122_v49  ;;  %v304_v51 = vpop.f32.mrb[2].mxu0  ;;  %220 = vst [vmem:[%s556_s3 + $0x50] sm:$0xff] %v172_v50  ;;  %v319_v52 = vpop.f32.mrb[2].mxu1 }
  0xfc   :  { %v137_v53 = vadd.f32 %v304_v51, %v232_v42  ;;  %v131_v54 = vpop.f32.mrb[3].mxu0  ;;  %v187_v55 = vadd.f32 %v319_v52, %v232_v42  ;;  %v181_v56 = vpop.f32.mrb[3].mxu1 }
  0xfd   :  { %v132_v57 = vadd.f32 %v232_v42, %v131_v54  ;;  %v182_v58 = vadd.f32 %v232_v42, %v181_v56 }
  0xfe   :  { %213 = vst [vmem:[%s556_s3 + $0x18] sm:$0xff] %v137_v53  ;;  %223 = vst [vmem:[%s556_s3 + $0x68] sm:$0xff] %v187_v55 }
  0xff   :  { %212 = vst [vmem:[%s556_s3 + $0x10] sm:$0xff] %v132_v57  ;;  %v307_v59 = vpop.f32.mrb[4].mxu0  ;;  %222 = vst [vmem:[%s556_s3 + $0x60] sm:$0xff] %v182_v58  ;;  %v322_v60 = vpop.f32.mrb[4].mxu1 }
 0x100   :  { %v147_v61 = vadd.f32 %v307_v59, %v232_v42  ;;  %v141_v62 = vpop.f32.mrb[5].mxu0  ;;  %v197_v63 = vadd.f32 %v322_v60, %v232_v42  ;;  %v191_v0 = vpop.f32.mrb[5].mxu1 }
 0x101   :  { %v142_v1 = vadd.f32 %v232_v42, %v141_v62  ;;  %v192_v2 = vadd.f32 %v232_v42, %v191_v0 }
 0x102   :  { %215 = vst [vmem:[%s556_s3 + $0x28] sm:$0xff] %v147_v61  ;;  %225 = vst [vmem:[%s556_s3 + $0x78] sm:$0xff] %v197_v63 }
 0x103   :  { %214 = vst [vmem:[%s556_s3 + $0x20] sm:$0xff] %v142_v1  ;;  %v310_v3 = vpop.f32.mrb[6].mxu0  ;;  %224 = vst [vmem:[%s556_s3 + $0x70] sm:$0xff] %v192_v2  ;;  %v325_v4 = vpop.f32.mrb[6].mxu1 }
 0x104   :  { %v157_v5 = vadd.f32 %v310_v3, %v232_v42  ;;  %v151_v6 = vpop.f32.mrb[7].mxu0  ;;  %v207_v7 = vadd.f32 %v325_v4, %v232_v42  ;;  %v201_v8 = vpop.f32.mrb[7].mxu1 }
 0x105   :  { %v152_v9 = vadd.f32 %v232_v42, %v151_v6  ;;  %v202_v10 = vadd.f32 %v232_v42, %v201_v8 }
 0x106   :  { %217 = vst [vmem:[%s556_s3 + $0x38] sm:$0xff] %v157_v5  ;;  %227 = vst [vmem:[%s556_s3 + $0x88] sm:$0xff] %v207_v7 }
 0x107   :  { %216 = vst [vmem:[%s556_s3 + $0x30] sm:$0xff] %v152_v9  ;;  %v313_v11 = vpop.f32.mrb[8].mxu0  ;;  %226 = vst [vmem:[%s556_s3 + $0x80] sm:$0xff] %v202_v10 }
 0x108   :  { %v167_v12 = vadd.f32 %v313_v11, %v232_v42  ;;  %v161_v13 = vpop.f32.mrb[9].mxu0 }
 0x109   :  { %v162_v14 = vadd.f32 %v232_v42, %v161_v13 }
 0x10a   :  { %219 = vst [vmem:[%s556_s3 + $0x48] sm:$0xff] %v167_v12 }
 0x10b   :  { %218 = vst [vmem:[%s556_s3 + $0x40] sm:$0xff] %v162_v14 }

</bundles_post_ra>
